<compile_context>
chip_gen: v5e
topology: v5e:2x2
jax: 0.10.0
libtpu: 0.0.40
codegen_flags: <defaults>
</compile_context>

<pallas_src>
import functools
from math import sqrt

import jax
import jax.numpy as jnp
from jax import lax
from jax.experimental import pallas as pl
from jax.experimental.pallas import tpu as pltpu


def _mhsa_kernel(x_ref, w_ref, o_ref, *, num_heads, dim_k, dim_v, norm_fact,
                 compute_dtype):
    # x_ref : (n, dim_in)                 -> current batch element (leading dim squeezed)
    # w_ref : (dim_in, 2*dim_k + dim_v)   -> fused [Wq.T | Wk.T | Wv.T], resident
    # o_ref : (n, dim_v)                  -> out[b], heads concatenated on lanes
    dk = dim_k // num_heads
    dv = dim_v // num_heads

    x = x_ref[...].astype(compute_dtype)          # bf16 operands for the MXU
    w = w_ref[...]                                # already compute_dtype (wrapper cast)

    # Fused Q/K/V projection: one well-shaped matmul, f32 accumulation.
    qkv = jnp.dot(x, w, preferred_element_type=jnp.float32)   # (n, 2*dim_k + dim_v) f32

    head_outs = []
    for h in range(num_heads):                    # static unroll over heads
        q = qkv[:, h * dk:(h + 1) * dk]                                   # (n, dk) f32
        k = qkv[:, dim_k + h * dk: dim_k + (h + 1) * dk]                  # (n, dk) f32
        v = qkv[:, 2 * dim_k + h * dv: 2 * dim_k + (h + 1) * dv]          # (n, dv) f32

        # Scores: contract on the last axes (no in-kernel transposes).
        s = lax.dot_general(q.astype(compute_dtype), k.astype(compute_dtype),
                            (((1,), (1,)), ((), ())),
                            preferred_element_type=jnp.float32) * norm_fact  # (n, n)

        # Stable softmax in f32; reciprocal on the EUP.
        s = s - jnp.max(s, axis=-1, keepdims=True)
        p = jnp.exp(s)
        p = p * pl.reciprocal(jnp.sum(p, axis=-1, keepdims=True), approx=True)

        att_h = jnp.dot(p.astype(compute_dtype), v.astype(compute_dtype),
                        preferred_element_type=jnp.float32)               # (n, dv)
        head_outs.append(att_h)

    # Heads concatenated along lanes -> single lane-dense store, already in the
    # PyTorch output layout (batch, n, dim_v). No wrapper transpose needed.
    o_ref[...] = jnp.concatenate(head_outs, axis=-1).astype(o_ref.dtype)


def multi_head_self_attention(x, wq, wk, wv, num_heads,
                              compute_dtype=jnp.bfloat16):
    """x: (batch, n, dim_in); wq/wk: (dim_k, dim_in); wv: (dim_v, dim_in).

    Weights follow nn.Linear convention (out_features, in_features).
    Returns (batch, n, dim_v), identical layout to the PyTorch module.
    """
    batch, n, dim_in = x.shape
    dim_k = wq.shape[0]
    dim_v = wv.shape[0]
    assert dim_k % num_heads == 0 and dim_v % num_heads == 0
    dk = dim_k // num_heads
    norm_fact = 1.0 / sqrt(dk)

    # Fused, pre-transposed projection weight (dim_in, 2*dim_k + dim_v).
    # nn.Linear: y = x @ W.T, and head h owns output columns [h*dk:(h+1)*dk]
    # within each of the Q / K / V sections (matches the PyTorch reshape order).
    w_qkv = jnp.concatenate([wq.T, wk.T, wv.T], axis=1).astype(compute_dtype)

    kernel = functools.partial(
        _mhsa_kernel, num_heads=num_heads, dim_k=dim_k, dim_v=dim_v,
        norm_fact=norm_fact, compute_dtype=compute_dtype)

    out = pl.pallas_call(
        kernel,
        out_shape=jax.ShapeDtypeStruct((batch, n, dim_v), x.dtype),
        grid_spec=pltpu.PrefetchScalarGridSpec(
            num_scalar_prefetch=0,
            grid=(batch,),
            in_specs=[
                # Per-batch activation tile (leading batch dim squeezed).
                pl.BlockSpec((None, n, dim_in), lambda b: (b, 0, 0)),
                # Fused weights: constant index_map -> fetched once, stays resident.
                pl.BlockSpec((dim_in, 2 * dim_k + dim_v), lambda b: (0, 0)),
            ],
            out_specs=pl.BlockSpec((None, n, dim_v), lambda b: (b, 0, 0)),
        ),
        compiler_params=pltpu.CompilerParams(
            # Batch axis parallel -> shards across the 2 TensorCores on v7x.
            dimension_semantics=("parallel",)),
    )(x, w_qkv)
    return out


def reference_mhsa(x, wq, wk, wv, num_heads):
    batch, n, dim_in = x.shape
    dim_k = wq.shape[0]
    dim_v = wv.shape[0]
    dk = dim_k // num_heads
    dv = dim_v // num_heads
    q = (x @ wq.T).reshape(batch, n, num_heads, dk).transpose(0, 2, 1, 3)
    k = (x @ wk.T).reshape(batch, n, num_heads, dk).transpose(0, 2, 1, 3)
    v = (x @ wv.T).reshape(batch, n, num_heads, dv).transpose(0, 2, 1, 3)
    dist = jnp.einsum("bhqd,bhkd->bhqk", q, k) * (1.0 / sqrt(dk))
    dist = jax.nn.softmax(dist, axis=-1)
    att = jnp.einsum("bhqk,bhkd->bhqd", dist, v)
    return att.transpose(0, 2, 1, 3).reshape(batch, n, dim_v)


if __name__ == "__main__":
    # Module config consistent with the forward: dim_in=32, dim_k=32, dim_v=32,
    # num_heads=8 -> dk=dv=4. Input x: (batch=2, seq=8, dim_in=32).
    batch, n, dim_in = 2, 8, 32
    dim_k, dim_v, num_heads = 32, 32, 8

    key = jax.random.PRNGKey(0)
    kx, kq, kk, kv = jax.random.split(key, 4)
    x = jax.random.normal(kx, (batch, n, dim_in), dtype=jnp.float32)
    bound = 1.0 / sqrt(dim_in)
    wq = jax.random.uniform(kq, (dim_k, dim_in), jnp.float32, -bound, bound)
    wk = jax.random.uniform(kk, (dim_k, dim_in), jnp.float32, -bound, bound)
    wv = jax.random.uniform(kv, (dim_v, dim_in), jnp.float32, -bound, bound)

    out = multi_head_self_attention(x, wq, wk, wv, num_heads)
    out = jax.block_until_ready(out)

    ref = reference_mhsa(x, wq, wk, wv, num_heads)
    assert out.shape == (batch, n, dim_v)
    # Tolerance relaxed (per review note) because MXU operands are bf16 and the
    # softmax denominator uses the hardware-approximate reciprocal.
    assert jnp.allclose(out, ref, atol=2e-2, rtol=2e-2)

    print("KERNEL_OK")
</pallas_src>

<mosaic_0001>
module attributes {stable_mosaic.version = 11 : i64} {
  func.func @_mhsa_kernel(%arg0: i32, %arg1: memref<1x8x32xf32, #tpu.memory_space<vmem>>, %arg2: memref<32x96xbf16, #tpu.memory_space<vmem>>, %arg3: memref<1x8x32xf32, #tpu.memory_space<vmem>>) attributes {dimension_semantics = [#tpu.dimension_semantics<parallel>], iteration_bounds = array<i64: 2>, scalar_prefetch = 0 : i64, scratch_operands = 0 : i64, tpu.core_type = #tpu.core_type<tc>, window_params = [{transform_indices = @transform_0, window_bounds = array<i64: 1, 8, 32>}, {pipeline_mode = #tpu.pipeline_mode<synchronous>, transform_indices = @transform_1, window_bounds = array<i64: 32, 96>}, {transform_indices = @transform_2, window_bounds = array<i64: 1, 8, 32>}]} {
    %c0 = arith.constant 0 : index
    %c0_0 = arith.constant 0 : index
    %c0_1 = arith.constant 0 : index
    %0 = vector.load %arg1[%c0, %c0_0, %c0_1] : memref<1x8x32xf32, #tpu.memory_space<vmem>>, vector<1x8x32xf32>
    %1 = vector.shape_cast %0 : vector<1x8x32xf32> to vector<8x32xf32>
    %2 = arith.truncf %1 : vector<8x32xf32> to vector<8x32xbf16>
    %c0_2 = arith.constant 0 : index
    %c0_3 = arith.constant 0 : index
    %3 = vector.load %arg2[%c0_2, %c0_3] : memref<32x96xbf16, #tpu.memory_space<vmem>>, vector<32x96xbf16>
    %cst = arith.constant dense<0.000000e+00> : vector<8x96xf32>
    %4 = tpu.matmul %2, %3, %cst {dimension_numbers = #tpu.dot_dimension_numbers<[1], [0], [0], [1], [0, 0, 1, 1], [], []>} : vector<8x32xbf16>, vector<32x96xbf16>, vector<8x96xf32> -> vector<8x96xf32>
    %5 = vector.extract_strided_slice %4 {offsets = [0, 0], sizes = [8, 4], strides = [1, 1]} : vector<8x96xf32> to vector<8x4xf32>
    %6 = vector.extract_strided_slice %4 {offsets = [0, 32], sizes = [8, 4], strides = [1, 1]} : vector<8x96xf32> to vector<8x4xf32>
    %7 = vector.extract_strided_slice %4 {offsets = [0, 64], sizes = [8, 4], strides = [1, 1]} : vector<8x96xf32> to vector<8x4xf32>
    %8 = arith.truncf %5 : vector<8x4xf32> to vector<8x4xbf16>
    %9 = arith.truncf %6 : vector<8x4xf32> to vector<8x4xbf16>
    %cst_4 = arith.constant dense<0.000000e+00> : vector<8x8xf32>
    %10 = tpu.matmul %8, %9, %cst_4 {dimension_numbers = #tpu.dot_dimension_numbers<[1], [1], [0], [0], [0, 0, 1, 0], [], []>} : vector<8x4xbf16>, vector<8x4xbf16>, vector<8x8xf32> -> vector<8x8xf32>
    %cst_5 = arith.constant 5.000000e-01 : f32
    %11 = vector.broadcast %cst_5 : f32 to vector<8x8xf32>
    %12 = arith.mulf %10, %11 : vector<8x8xf32>
    %cst_6 = arith.constant dense<0xFF800000> : vector<8xf32>
    %13 = vector.multi_reduction <maximumf>, %12, %cst_6 [1] : vector<8x8xf32> to vector<8xf32>
    %14 = vector.shape_cast %13 : vector<8xf32> to vector<8x1xf32>
    %15 = vector.broadcast %14 : vector<8x1xf32> to vector<8x8xf32>
    %16 = arith.subf %12, %15 : vector<8x8xf32>
    %17 = math.exp %16 : vector<8x8xf32>
    %cst_7 = arith.constant dense<0.000000e+00> : vector<8xf32>
    %18 = vector.multi_reduction <add>, %17, %cst_7 [1] : vector<8x8xf32> to vector<8xf32>
    %19 = vector.shape_cast %18 : vector<8xf32> to vector<8x1xf32>
    %20 = tpu.reciprocal %19 {approx = true} : vector<8x1xf32> -> vector<8x1xf32>
    %21 = vector.broadcast %20 : vector<8x1xf32> to vector<8x8xf32>
    %22 = arith.mulf %17, %21 : vector<8x8xf32>
    %23 = arith.truncf %22 : vector<8x8xf32> to vector<8x8xbf16>
    %24 = arith.truncf %7 : vector<8x4xf32> to vector<8x4xbf16>
    %cst_8 = arith.constant dense<0.000000e+00> : vector<8x4xf32>
    %25 = tpu.matmul %23, %24, %cst_8 {dimension_numbers = #tpu.dot_dimension_numbers<[1], [0], [0], [1], [0, 0, 1, 1], [], []>} : vector<8x8xbf16>, vector<8x4xbf16>, vector<8x4xf32> -> vector<8x4xf32>
    %26 = vector.extract_strided_slice %4 {offsets = [0, 4], sizes = [8, 4], strides = [1, 1]} : vector<8x96xf32> to vector<8x4xf32>
    %27 = vector.extract_strided_slice %4 {offsets = [0, 36], sizes = [8, 4], strides = [1, 1]} : vector<8x96xf32> to vector<8x4xf32>
    %28 = vector.extract_strided_slice %4 {offsets = [0, 68], sizes = [8, 4], strides = [1, 1]} : vector<8x96xf32> to vector<8x4xf32>
    %29 = arith.truncf %26 : vector<8x4xf32> to vector<8x4xbf16>
    %30 = arith.truncf %27 : vector<8x4xf32> to vector<8x4xbf16>
    %cst_9 = arith.constant dense<0.000000e+00> : vector<8x8xf32>
    %31 = tpu.matmul %29, %30, %cst_9 {dimension_numbers = #tpu.dot_dimension_numbers<[1], [1], [0], [0], [0, 0, 1, 0], [], []>} : vector<8x4xbf16>, vector<8x4xbf16>, vector<8x8xf32> -> vector<8x8xf32>
    %cst_10 = arith.constant 5.000000e-01 : f32
    %32 = vector.broadcast %cst_10 : f32 to vector<8x8xf32>
    %33 = arith.mulf %31, %32 : vector<8x8xf32>
    %cst_11 = arith.constant dense<0xFF800000> : vector<8xf32>
    %34 = vector.multi_reduction <maximumf>, %33, %cst_11 [1] : vector<8x8xf32> to vector<8xf32>
    %35 = vector.shape_cast %34 : vector<8xf32> to vector<8x1xf32>
    %36 = vector.broadcast %35 : vector<8x1xf32> to vector<8x8xf32>
    %37 = arith.subf %33, %36 : vector<8x8xf32>
    %38 = math.exp %37 : vector<8x8xf32>
    %cst_12 = arith.constant dense<0.000000e+00> : vector<8xf32>
    %39 = vector.multi_reduction <add>, %38, %cst_12 [1] : vector<8x8xf32> to vector<8xf32>
    %40 = vector.shape_cast %39 : vector<8xf32> to vector<8x1xf32>
    %41 = tpu.reciprocal %40 {approx = true} : vector<8x1xf32> -> vector<8x1xf32>
    %42 = vector.broadcast %41 : vector<8x1xf32> to vector<8x8xf32>
    %43 = arith.mulf %38, %42 : vector<8x8xf32>
    %44 = arith.truncf %43 : vector<8x8xf32> to vector<8x8xbf16>
    %45 = arith.truncf %28 : vector<8x4xf32> to vector<8x4xbf16>
    %cst_13 = arith.constant dense<0.000000e+00> : vector<8x4xf32>
    %46 = tpu.matmul %44, %45, %cst_13 {dimension_numbers = #tpu.dot_dimension_numbers<[1], [0], [0], [1], [0, 0, 1, 1], [], []>} : vector<8x8xbf16>, vector<8x4xbf16>, vector<8x4xf32> -> vector<8x4xf32>
    %47 = vector.extract_strided_slice %4 {offsets = [0, 8], sizes = [8, 4], strides = [1, 1]} : vector<8x96xf32> to vector<8x4xf32>
    %48 = vector.extract_strided_slice %4 {offsets = [0, 40], sizes = [8, 4], strides = [1, 1]} : vector<8x96xf32> to vector<8x4xf32>
    %49 = vector.extract_strided_slice %4 {offsets = [0, 72], sizes = [8, 4], strides = [1, 1]} : vector<8x96xf32> to vector<8x4xf32>
    %50 = arith.truncf %47 : vector<8x4xf32> to vector<8x4xbf16>
    %51 = arith.truncf %48 : vector<8x4xf32> to vector<8x4xbf16>
    %cst_14 = arith.constant dense<0.000000e+00> : vector<8x8xf32>
    %52 = tpu.matmul %50, %51, %cst_14 {dimension_numbers = #tpu.dot_dimension_numbers<[1], [1], [0], [0], [0, 0, 1, 0], [], []>} : vector<8x4xbf16>, vector<8x4xbf16>, vector<8x8xf32> -> vector<8x8xf32>
    %cst_15 = arith.constant 5.000000e-01 : f32
    %53 = vector.broadcast %cst_15 : f32 to vector<8x8xf32>
    %54 = arith.mulf %52, %53 : vector<8x8xf32>
    %cst_16 = arith.constant dense<0xFF800000> : vector<8xf32>
    %55 = vector.multi_reduction <maximumf>, %54, %cst_16 [1] : vector<8x8xf32> to vector<8xf32>
    %56 = vector.shape_cast %55 : vector<8xf32> to vector<8x1xf32>
    %57 = vector.broadcast %56 : vector<8x1xf32> to vector<8x8xf32>
    %58 = arith.subf %54, %57 : vector<8x8xf32>
    %59 = math.exp %58 : vector<8x8xf32>
    %cst_17 = arith.constant dense<0.000000e+00> : vector<8xf32>
    %60 = vector.multi_reduction <add>, %59, %cst_17 [1] : vector<8x8xf32> to vector<8xf32>
    %61 = vector.shape_cast %60 : vector<8xf32> to vector<8x1xf32>
    %62 = tpu.reciprocal %61 {approx = true} : vector<8x1xf32> -> vector<8x1xf32>
    %63 = vector.broadcast %62 : vector<8x1xf32> to vector<8x8xf32>
    %64 = arith.mulf %59, %63 : vector<8x8xf32>
    %65 = arith.truncf %64 : vector<8x8xf32> to vector<8x8xbf16>
    %66 = arith.truncf %49 : vector<8x4xf32> to vector<8x4xbf16>
    %cst_18 = arith.constant dense<0.000000e+00> : vector<8x4xf32>
    %67 = tpu.matmul %65, %66, %cst_18 {dimension_numbers = #tpu.dot_dimension_numbers<[1], [0], [0], [1], [0, 0, 1, 1], [], []>} : vector<8x8xbf16>, vector<8x4xbf16>, vector<8x4xf32> -> vector<8x4xf32>
    %68 = vector.extract_strided_slice %4 {offsets = [0, 12], sizes = [8, 4], strides = [1, 1]} : vector<8x96xf32> to vector<8x4xf32>
    %69 = vector.extract_strided_slice %4 {offsets = [0, 44], sizes = [8, 4], strides = [1, 1]} : vector<8x96xf32> to vector<8x4xf32>
    %70 = vector.extract_strided_slice %4 {offsets = [0, 76], sizes = [8, 4], strides = [1, 1]} : vector<8x96xf32> to vector<8x4xf32>
    %71 = arith.truncf %68 : vector<8x4xf32> to vector<8x4xbf16>
    %72 = arith.truncf %69 : vector<8x4xf32> to vector<8x4xbf16>
    %cst_19 = arith.constant dense<0.000000e+00> : vector<8x8xf32>
    %73 = tpu.matmul %71, %72, %cst_19 {dimension_numbers = #tpu.dot_dimension_numbers<[1], [1], [0], [0], [0, 0, 1, 0], [], []>} : vector<8x4xbf16>, vector<8x4xbf16>, vector<8x8xf32> -> vector<8x8xf32>
    %cst_20 = arith.constant 5.000000e-01 : f32
    %74 = vector.broadcast %cst_20 : f32 to vector<8x8xf32>
    %75 = arith.mulf %73, %74 : vector<8x8xf32>
    %cst_21 = arith.constant dense<0xFF800000> : vector<8xf32>
    %76 = vector.multi_reduction <maximumf>, %75, %cst_21 [1] : vector<8x8xf32> to vector<8xf32>
    %77 = vector.shape_cast %76 : vector<8xf32> to vector<8x1xf32>
    %78 = vector.broadcast %77 : vector<8x1xf32> to vector<8x8xf32>
    %79 = arith.subf %75, %78 : vector<8x8xf32>
    %80 = math.exp %79 : vector<8x8xf32>
    %cst_22 = arith.constant dense<0.000000e+00> : vector<8xf32>
    %81 = vector.multi_reduction <add>, %80, %cst_22 [1] : vector<8x8xf32> to vector<8xf32>
    %82 = vector.shape_cast %81 : vector<8xf32> to vector<8x1xf32>
    %83 = tpu.reciprocal %82 {approx = true} : vector<8x1xf32> -> vector<8x1xf32>
    %84 = vector.broadcast %83 : vector<8x1xf32> to vector<8x8xf32>
    %85 = arith.mulf %80, %84 : vector<8x8xf32>
    %86 = arith.truncf %85 : vector<8x8xf32> to vector<8x8xbf16>
    %87 = arith.truncf %70 : vector<8x4xf32> to vector<8x4xbf16>
    %cst_23 = arith.constant dense<0.000000e+00> : vector<8x4xf32>
    %88 = tpu.matmul %86, %87, %cst_23 {dimension_numbers = #tpu.dot_dimension_numbers<[1], [0], [0], [1], [0, 0, 1, 1], [], []>} : vector<8x8xbf16>, vector<8x4xbf16>, vector<8x4xf32> -> vector<8x4xf32>
    %89 = vector.extract_strided_slice %4 {offsets = [0, 16], sizes = [8, 4], strides = [1, 1]} : vector<8x96xf32> to vector<8x4xf32>
    %90 = vector.extract_strided_slice %4 {offsets = [0, 48], sizes = [8, 4], strides = [1, 1]} : vector<8x96xf32> to vector<8x4xf32>
    %91 = vector.extract_strided_slice %4 {offsets = [0, 80], sizes = [8, 4], strides = [1, 1]} : vector<8x96xf32> to vector<8x4xf32>
    %92 = arith.truncf %89 : vector<8x4xf32> to vector<8x4xbf16>
    %93 = arith.truncf %90 : vector<8x4xf32> to vector<8x4xbf16>
    %cst_24 = arith.constant dense<0.000000e+00> : vector<8x8xf32>
    %94 = tpu.matmul %92, %93, %cst_24 {dimension_numbers = #tpu.dot_dimension_numbers<[1], [1], [0], [0], [0, 0, 1, 0], [], []>} : vector<8x4xbf16>, vector<8x4xbf16>, vector<8x8xf32> -> vector<8x8xf32>
    %cst_25 = arith.constant 5.000000e-01 : f32
    %95 = vector.broadcast %cst_25 : f32 to vector<8x8xf32>
    %96 = arith.mulf %94, %95 : vector<8x8xf32>
    %cst_26 = arith.constant dense<0xFF800000> : vector<8xf32>
    %97 = vector.multi_reduction <maximumf>, %96, %cst_26 [1] : vector<8x8xf32> to vector<8xf32>
    %98 = vector.shape_cast %97 : vector<8xf32> to vector<8x1xf32>
    %99 = vector.broadcast %98 : vector<8x1xf32> to vector<8x8xf32>
    %100 = arith.subf %96, %99 : vector<8x8xf32>
    %101 = math.exp %100 : vector<8x8xf32>
    %cst_27 = arith.constant dense<0.000000e+00> : vector<8xf32>
    %102 = vector.multi_reduction <add>, %101, %cst_27 [1] : vector<8x8xf32> to vector<8xf32>
    %103 = vector.shape_cast %102 : vector<8xf32> to vector<8x1xf32>
    %104 = tpu.reciprocal %103 {approx = true} : vector<8x1xf32> -> vector<8x1xf32>
    %105 = vector.broadcast %104 : vector<8x1xf32> to vector<8x8xf32>
    %106 = arith.mulf %101, %105 : vector<8x8xf32>
    %107 = arith.truncf %106 : vector<8x8xf32> to vector<8x8xbf16>
    %108 = arith.truncf %91 : vector<8x4xf32> to vector<8x4xbf16>
    %cst_28 = arith.constant dense<0.000000e+00> : vector<8x4xf32>
    %109 = tpu.matmul %107, %108, %cst_28 {dimension_numbers = #tpu.dot_dimension_numbers<[1], [0], [0], [1], [0, 0, 1, 1], [], []>} : vector<8x8xbf16>, vector<8x4xbf16>, vector<8x4xf32> -> vector<8x4xf32>
    %110 = vector.extract_strided_slice %4 {offsets = [0, 20], sizes = [8, 4], strides = [1, 1]} : vector<8x96xf32> to vector<8x4xf32>
    %111 = vector.extract_strided_slice %4 {offsets = [0, 52], sizes = [8, 4], strides = [1, 1]} : vector<8x96xf32> to vector<8x4xf32>
    %112 = vector.extract_strided_slice %4 {offsets = [0, 84], sizes = [8, 4], strides = [1, 1]} : vector<8x96xf32> to vector<8x4xf32>
    %113 = arith.truncf %110 : vector<8x4xf32> to vector<8x4xbf16>
    %114 = arith.truncf %111 : vector<8x4xf32> to vector<8x4xbf16>
    %cst_29 = arith.constant dense<0.000000e+00> : vector<8x8xf32>
    %115 = tpu.matmul %113, %114, %cst_29 {dimension_numbers = #tpu.dot_dimension_numbers<[1], [1], [0], [0], [0, 0, 1, 0], [], []>} : vector<8x4xbf16>, vector<8x4xbf16>, vector<8x8xf32> -> vector<8x8xf32>
    %cst_30 = arith.constant 5.000000e-01 : f32
    %116 = vector.broadcast %cst_30 : f32 to vector<8x8xf32>
    %117 = arith.mulf %115, %116 : vector<8x8xf32>
    %cst_31 = arith.constant dense<0xFF800000> : vector<8xf32>
    %118 = vector.multi_reduction <maximumf>, %117, %cst_31 [1] : vector<8x8xf32> to vector<8xf32>
    %119 = vector.shape_cast %118 : vector<8xf32> to vector<8x1xf32>
    %120 = vector.broadcast %119 : vector<8x1xf32> to vector<8x8xf32>
    %121 = arith.subf %117, %120 : vector<8x8xf32>
    %122 = math.exp %121 : vector<8x8xf32>
    %cst_32 = arith.constant dense<0.000000e+00> : vector<8xf32>
    %123 = vector.multi_reduction <add>, %122, %cst_32 [1] : vector<8x8xf32> to vector<8xf32>
    %124 = vector.shape_cast %123 : vector<8xf32> to vector<8x1xf32>
    %125 = tpu.reciprocal %124 {approx = true} : vector<8x1xf32> -> vector<8x1xf32>
    %126 = vector.broadcast %125 : vector<8x1xf32> to vector<8x8xf32>
    %127 = arith.mulf %122, %126 : vector<8x8xf32>
    %128 = arith.truncf %127 : vector<8x8xf32> to vector<8x8xbf16>
    %129 = arith.truncf %112 : vector<8x4xf32> to vector<8x4xbf16>
    %cst_33 = arith.constant dense<0.000000e+00> : vector<8x4xf32>
    %130 = tpu.matmul %128, %129, %cst_33 {dimension_numbers = #tpu.dot_dimension_numbers<[1], [0], [0], [1], [0, 0, 1, 1], [], []>} : vector<8x8xbf16>, vector<8x4xbf16>, vector<8x4xf32> -> vector<8x4xf32>
    %131 = vector.extract_strided_slice %4 {offsets = [0, 24], sizes = [8, 4], strides = [1, 1]} : vector<8x96xf32> to vector<8x4xf32>
    %132 = vector.extract_strided_slice %4 {offsets = [0, 56], sizes = [8, 4], strides = [1, 1]} : vector<8x96xf32> to vector<8x4xf32>
    %133 = vector.extract_strided_slice %4 {offsets = [0, 88], sizes = [8, 4], strides = [1, 1]} : vector<8x96xf32> to vector<8x4xf32>
    %134 = arith.truncf %131 : vector<8x4xf32> to vector<8x4xbf16>
    %135 = arith.truncf %132 : vector<8x4xf32> to vector<8x4xbf16>
    %cst_34 = arith.constant dense<0.000000e+00> : vector<8x8xf32>
    %136 = tpu.matmul %134, %135, %cst_34 {dimension_numbers = #tpu.dot_dimension_numbers<[1], [1], [0], [0], [0, 0, 1, 0], [], []>} : vector<8x4xbf16>, vector<8x4xbf16>, vector<8x8xf32> -> vector<8x8xf32>
    %cst_35 = arith.constant 5.000000e-01 : f32
    %137 = vector.broadcast %cst_35 : f32 to vector<8x8xf32>
    %138 = arith.mulf %136, %137 : vector<8x8xf32>
    %cst_36 = arith.constant dense<0xFF800000> : vector<8xf32>
    %139 = vector.multi_reduction <maximumf>, %138, %cst_36 [1] : vector<8x8xf32> to vector<8xf32>
    %140 = vector.shape_cast %139 : vector<8xf32> to vector<8x1xf32>
    %141 = vector.broadcast %140 : vector<8x1xf32> to vector<8x8xf32>
    %142 = arith.subf %138, %141 : vector<8x8xf32>
    %143 = math.exp %142 : vector<8x8xf32>
    %cst_37 = arith.constant dense<0.000000e+00> : vector<8xf32>
    %144 = vector.multi_reduction <add>, %143, %cst_37 [1] : vector<8x8xf32> to vector<8xf32>
    %145 = vector.shape_cast %144 : vector<8xf32> to vector<8x1xf32>
    %146 = tpu.reciprocal %145 {approx = true} : vector<8x1xf32> -> vector<8x1xf32>
    %147 = vector.broadcast %146 : vector<8x1xf32> to vector<8x8xf32>
    %148 = arith.mulf %143, %147 : vector<8x8xf32>
    %149 = arith.truncf %148 : vector<8x8xf32> to vector<8x8xbf16>
    %150 = arith.truncf %133 : vector<8x4xf32> to vector<8x4xbf16>
    %cst_38 = arith.constant dense<0.000000e+00> : vector<8x4xf32>
    %151 = tpu.matmul %149, %150, %cst_38 {dimension_numbers = #tpu.dot_dimension_numbers<[1], [0], [0], [1], [0, 0, 1, 1], [], []>} : vector<8x8xbf16>, vector<8x4xbf16>, vector<8x4xf32> -> vector<8x4xf32>
    %152 = vector.extract_strided_slice %4 {offsets = [0, 28], sizes = [8, 4], strides = [1, 1]} : vector<8x96xf32> to vector<8x4xf32>
    %153 = vector.extract_strided_slice %4 {offsets = [0, 60], sizes = [8, 4], strides = [1, 1]} : vector<8x96xf32> to vector<8x4xf32>
    %154 = vector.extract_strided_slice %4 {offsets = [0, 92], sizes = [8, 4], strides = [1, 1]} : vector<8x96xf32> to vector<8x4xf32>
    %155 = arith.truncf %152 : vector<8x4xf32> to vector<8x4xbf16>
    %156 = arith.truncf %153 : vector<8x4xf32> to vector<8x4xbf16>
    %cst_39 = arith.constant dense<0.000000e+00> : vector<8x8xf32>
    %157 = tpu.matmul %155, %156, %cst_39 {dimension_numbers = #tpu.dot_dimension_numbers<[1], [1], [0], [0], [0, 0, 1, 0], [], []>} : vector<8x4xbf16>, vector<8x4xbf16>, vector<8x8xf32> -> vector<8x8xf32>
    %cst_40 = arith.constant 5.000000e-01 : f32
    %158 = vector.broadcast %cst_40 : f32 to vector<8x8xf32>
    %159 = arith.mulf %157, %158 : vector<8x8xf32>
    %cst_41 = arith.constant dense<0xFF800000> : vector<8xf32>
    %160 = vector.multi_reduction <maximumf>, %159, %cst_41 [1] : vector<8x8xf32> to vector<8xf32>
    %161 = vector.shape_cast %160 : vector<8xf32> to vector<8x1xf32>
    %162 = vector.broadcast %161 : vector<8x1xf32> to vector<8x8xf32>
    %163 = arith.subf %159, %162 : vector<8x8xf32>
    %164 = math.exp %163 : vector<8x8xf32>
    %cst_42 = arith.constant dense<0.000000e+00> : vector<8xf32>
    %165 = vector.multi_reduction <add>, %164, %cst_42 [1] : vector<8x8xf32> to vector<8xf32>
    %166 = vector.shape_cast %165 : vector<8xf32> to vector<8x1xf32>
    %167 = tpu.reciprocal %166 {approx = true} : vector<8x1xf32> -> vector<8x1xf32>
    %168 = vector.broadcast %167 : vector<8x1xf32> to vector<8x8xf32>
    %169 = arith.mulf %164, %168 : vector<8x8xf32>
    %170 = arith.truncf %169 : vector<8x8xf32> to vector<8x8xbf16>
    %171 = arith.truncf %154 : vector<8x4xf32> to vector<8x4xbf16>
    %cst_43 = arith.constant dense<0.000000e+00> : vector<8x4xf32>
    %172 = tpu.matmul %170, %171, %cst_43 {dimension_numbers = #tpu.dot_dimension_numbers<[1], [0], [0], [1], [0, 0, 1, 1], [], []>} : vector<8x8xbf16>, vector<8x4xbf16>, vector<8x4xf32> -> vector<8x4xf32>
    %173 = tpu.concatenate %25, %46, %67, %88, %109, %130, %151, %172 in 1 : vector<8x4xf32>, vector<8x4xf32>, vector<8x4xf32>, vector<8x4xf32>, vector<8x4xf32>, vector<8x4xf32>, vector<8x4xf32>, vector<8x4xf32> -> vector<8x32xf32>
    %c0_44 = arith.constant 0 : index
    %c0_45 = arith.constant 0 : index
    %c0_46 = arith.constant 0 : index
    %174 = vector.load %arg3[%c0_44, %c0_45, %c0_46] : memref<1x8x32xf32, #tpu.memory_space<vmem>>, vector<1x8x32xf32>
    %175 = vector.shape_cast %174 : vector<1x8x32xf32> to vector<8x32xf32>
    %176 = vector.shape_cast %173 : vector<8x32xf32> to vector<1x8x32xf32>
    tpu.vector_store %arg3[%c0_44, %c0_45, %c0_46], %176 {strides = array<i32>} : memref<1x8x32xf32, #tpu.memory_space<vmem>>, vector<1x8x32xf32>,
    return
  }
  func.func @transform_0(%arg0: i32) -> (i32, i32, i32) {
    %c0_i32 = arith.constant 0 : i32
    %c0_i32_0 = arith.constant 0 : i32
    %c0_i32_1 = arith.constant 0 : i32
    return %arg0, %c0_i32, %c0_i32_0 : i32, i32, i32
  }
  func.func @transform_1(%arg0: i32) -> (i32, i32) {
    %c0_i32 = arith.constant 0 : i32
    %c0_i32_0 = arith.constant 0 : i32
    %c0_i32_1 = arith.constant 0 : i32
    return %c0_i32, %c0_i32_0 : i32, i32
  }
  func.func @transform_2(%arg0: i32) -> (i32, i32, i32) {
    %c0_i32 = arith.constant 0 : i32
    %c0_i32_0 = arith.constant 0 : i32
    %c0_i32_1 = arith.constant 0 : i32
    return %arg0, %c0_i32, %c0_i32_0 : i32, i32, i32
  }
}

</mosaic_0001>

<bundles_post_ra>
// kernel: tpu_custom_call.1
= control target key start
LH: loop header
LB: loop body
LE: loop exit
PB: predicated region body
PF: predicated region fallthrough
CT: control target
= control target key end

     0   :  { %7 = vsyncpa [#allocation3], 0  ;;  %s1402_s0 = inlined_call_operand.hbm [shape: f32[2,8,32], index: 0, kind: input, shape index: {}]   ;;  %s1403_s1 = inlined_call_operand.hbm [shape: bf16[32,96], index: 1, kind: input, shape index: {}]   ;;  %s1404_s2 = inlined_call_operand.hbm [shape: f32[2,8,32], index: 2, kind: output, shape index: {}]  }
   0x1   :  { %9 = vsyncpa [#allocation3 + $0x1], 0 }
   0x2   :  { %10 = vsyncpa [#allocation6], 0 }
   0x3   :  { %11 = vsyncpa [#allocation4], 0 }
   0x4   :  { %13 = vsyncpa [#allocation4 + $0x1], 0  ;;  %s1152_s9 = smov 0   ;;  %s1154_s10 = smov 0  }
   0x5   :  { %s1156_s11 = smov 0   ;;  %s1158_s12 = smov 0  }
   0x6 LB: > { %s108_s15 = sshll.u32 %s1403_s1, 4  ;;  %s1176_s16 = sadd.s32 4294967295, %s1102_s12   ;;  %s1102_s12 = sphi %s1158_s12, %s1414_s12   ;;  %s1098_s11 = sphi %s1156_s11, %s1413_s11   ;;  %s1094_s10 = sphi %s1154_s10, %s1412_s10   ;;  %s1090_s9 = sphi %s1152_s9, %s1411_s9   ;;  %s109_s15 = int_to_ptr.hbm [resolvable:$true] %s108_s15 }
   0x7   : > { %p811_p0 = scmp.ge.s32.totalorder %s1102_s12, 1  ;;  %p40_p1 = scmp.eq.s32.totalorder %s1176_s16, 0 }
   0x8   : > { %p97_p2 = scmp.lt.s32.totalorder %s1102_s12, 3  ;;  %s1104_s18 = smov [#allocation5]  }
   0x9   : > { %s110_s19 = sshll.u32 %s1104_s18, 4  ;;  %s1105_s20 = smov 64   ;;  %s111_s19 = int_to_ptr.vmem [resolvable:$true] %s110_s19 }
   0xa   : > { %p1181_p3 = pnand %p811_p0, %p97_p2  ;;  %s1106_s21 = smov 4  }
   0xb   : > { %s810_s22 = sadd.s32 4294967294, %s1102_s12   ;;  %s1192_s23 = sadd.s32 1, %s1102_s12  }
   0xc   : > { %p859_p4 = pneg %p1181_p3  ;;  %s26_s24 = sadd.s32 1, %s1098_s11 }
   0xd   : > { %s23_s25 = ssub.s32 %s1102_s12, %s1192_s23  ;;  %p33_p7 = scmp.ne.s32.totalorder %s1098_s11, %s1094_s10 }
   0xe   : > { %p860_p6 = pnand %p859_p4, %p40_p1  ;;  %p24_p8 = scmp.eq.s32.totalorder %s23_s25, 0 }
   0xf   : > { %p34_p9 = scmp.eq.s32.totalorder %s1102_s12, 0  ;;  %p39_p10 = scmp.ne.s32.totalorder %s1094_s10, %s1090_s9 }
  0x10   : > { %862 = dma.hbm_to_vmem [thread:$0]  (!%p860_p6), %s109_s15, 256, %s111_s19, [#allocation6], %s1105_s20, %s1105_s20, %s1106_s21  }
  0x11   : > { %p84_p11 = scmp.eq.s32.totalorder %s1176_s16, 1  ;;  %p1208_p12 = por %p40_p1, %p39_p10 }
  0x12   : > { %s1204_s26 = scalar_select %p24_p8, %s1098_s11, %s26_s24  }
  0x13   : > { %p1212_p13 = por %p84_p11, %p33_p7  ;;  %p90_p0 = scmp.eq.s32.totalorder %s810_s22, 1 }
  0x14   : > { %p35_p2 = por %p34_p9, %p33_p7  ;;  %s124_s29 = sand.u32 1, %s1098_s11  }
  0x15   : > { %p1217_p4 = por %p90_p0, %p39_p10  ;;  %p872_p6 = scmp.lt.s32.totalorder %s1102_s12, 2 }
  0x16   : > { %s814_s3 = sshll.u32 %s124_s29, 3  ;;  %s815_s4 = sshll.u32 %s1102_s12, 3 }
  0x17   : > { %s132_s7 = scalar_lea.hbm %s1402_s0, %s815_s4  ;;  %s128_s13 = scalar_lea.vmem [#allocation2], %s814_s3 }
  0x18   : > { %s134_s8 = sshll.u32 %s132_s7, 4  ;;  %s136_s14 = sshll.u32 %s128_s13, 4  ;;  %s135_s8 = int_to_ptr.hbm [resolvable:$true] %s134_s8  ;;  %s137_s14 = int_to_ptr.vmem [resolvable:$true] %s136_s14 }
  0x19   : > { %p1226_p8 = pnand %p872_p6, %p35_p2  ;;  %s125_s18 = scalar_lea.sflag [#allocation3], %s124_s29 }
  0x1a   : > { %s1002_s19 = sshra.s32 %s135_s8, 4  ;;  %s1009_s24 = scalar_lea.hbm %s1402_s0, 16  ;;  %s1003_s19 = int_to_ptr.hbm [resolvable:$true] %s1002_s19 }
  0x1b   : > { %s1004_s20 = scalar_lea.hbm %s1003_s19, 8  ;;  %p1006_p9 = pneg %p1226_p8 }
  0x1c   : > { %p1005_p7 = scmp.ne.s32.totalorder %s1003_s19, %s1004_s20  ;;  %p1010_p0 = scmp.lt.s32.totalorder %s1003_s19, %s1402_s0 }
  0x1d   : > { %p1011_p2 = scmp.lt.s32.totalorder %s1009_s24, %s1004_s20 }
  0x1e   : > { %p1007_p10 = pnand %p1006_p9, %p1005_p7 }
  0x1f   : > { %p1012_p6 = por %p1011_p2, %p1010_p0 }
  0x20   : > { %p1008_p11 = pneg %p1007_p10 }
  0x22   : > { %p1013_p5 = pnand %p1012_p6, %p1008_p11 }
  0x24   : > { %1016 = shalt.err (!%p1013_p5)
}
  0x25   : > { %866 = dma.hbm_to_vmem [thread:$0]  (!%p1226_p8), %s135_s8, 128, %s137_s14, %s125_s18  }
  0x26   : > { %145 = sbr.rel (%p1181_p3) target bundleno = 1034 (0x40a), region = 28  ;;  %s1243_s29 = sand.u32 (!%p1181_p3), 1, %s1094_s10  }
  0x27   : > { %s817_s4 = sshll.u32 (!%p1181_p3), %s1243_s29, 3  ;;  %s148_s5 = scalar_lea.sflag (!%p1181_p3), [#allocation3], %s1243_s29 }
  0x28   : > { %s151_s6 = scalar_lea.vmem (!%p1181_p3), [#allocation2], %s817_s4 }
  0x2b   : > { %1077 = dma.done.wait (%p1208_p12), %s148_s5, 128  }
  0x2c   : > { %1079 = vsyncadd (%p1208_p12), %s148_s5, 4294967168 }
  0x2d   : > { %1081 = dma.done.wait (%p40_p1), [#allocation6], 256  }
  0x2e   : > { %1083 = vsyncadd (%p40_p1), [#allocation6], 4294967040  ;;  %v850_v0 = vld [vmem:[#allocation5 + $0x8] sm:$0xff]  ;;  %v849_v1 = vld [vmem:[#allocation5] sm:$0xff]  ;;  %vm197_vm0 = vcmask 261120   ;;  %s1107_s17 = smov 116  }
  0x2f   : > { %207 = vmatpush.bf16.msra.mxu0 %v850_v0  ;;  %v179_v2 = vld [vmem:[%s151_s6] sm:$0xff]  ;;  %s1108_s27 = smov 124   ;;  %s1109_s7 = smov 96   ;;  %vm218_vm1 = vcmask 31744   ;;  %vm239_vm2 = vcmask 64512   ;;  %vm257_vm3 = vcmask 1043456  }
  0x30   : > { %v180_v3 = vpack.c.bf16 %v179_v2, %v179_v2  ;;  %s1110_s8 = smov 88   ;;  %s1111_s13 = smov 84   ;;  %vm703_vm4 = vcmask 97280   ;;  %vm705_vm5 = vcmask 130048   ;;  %vm707_vm6 = vcmask 162816  }
  0x31   : > { %s1112_s14 = smov 92   ;;  %s1113_s15 = smov 108   ;;  %vm709_vm7 = vcmask 195584   ;;  %vm711_vm8 = vcmask 228352  }
  0x32   : > { %s1114_s18 = smov 120   ;;  %s1115_s19 = smov 76  }
  0x33   : > { %208 = vmatpush.bf16.msra.mxu0 %v849_v1  ;;  %s1116_s20 = smov 112   ;;  %s1117_s21 = smov 68  }
  0x34   : > { %s1118_s22 = smov 80   ;;  %s1119_s24 = smov 104  }
  0x35   : > { %s1120_s25 = smov 72   ;;  %s1121_s3 = smov 100  }
  0x36   : > { %828 = vmatmul.msk.bf16.vlgmr.msra.gmra.mxu0 %vm197_vm0, %v180_v3  ;;  %s1122_s5 = smov 60   ;;  %s1123_s6 = smov 64  }
  0xb3   : > { %v210_v4 = vpop.f32.mrf.mxu0 }
  0xb4   : > { %v1258_v5 = vpack.c.bf16 %v210_v4, %v210_v4 }
  0xb6   : > { %388 = vrot.lane.b32.xlu2 %v1258_v5, %s1107_s17  ;;  %274 = vrot.lane.b32.xlu1 %v1258_v5, %s1108_s27  ;;  %s1124_s17 = smov 52   ;;  %s1125_s27 = smov 44  }
  0xb7   : > { %216 = vrot.lane.b32.xlu0 %v1258_v5, %s1109_s7  ;;  %s1126_s7 = smov 48  }
  0xbb   : > { %v212_v6 = vpop.f32.mrf.mxu0 }
  0xbe   : > { %333 = vrot.lane.b32.xlu2 %v1258_v5, %s1110_s8  ;;  %390 = vrot.lane.b32.xlu1 %v1258_v5, %s1111_s13  ;;  %s1127_s8 = smov 56   ;;  %s1128_s13 = smov 36  }
  0xbf   : > { %276 = vrot.lane.b32.xlu0 %v1258_v5, %s1112_s14  ;;  %s1129_s14 = smov 40  }
  0xc6   : > { %502 = vrot.lane.b32.xlu2 %v1258_v5, %s1113_s15  ;;  %331 = vrot.lane.b32.xlu1 %v1258_v5, %s1114_s18  ;;  %s1130_s15 = smov 8   ;;  %s1131_s18 = smov 4  }
  0xc7   : > { %504 = vrot.lane.b32.xlu0 %v1258_v5, %s1115_s19  ;;  %s1132_s19 = smov 16  }
  0xce   : > { %445 = vrot.lane.b32.xlu2 %v1258_v5, %s1116_s20  ;;  %618 = vrot.lane.b32.xlu1 %v1258_v5, %s1117_s21  ;;  %s1133_s20 = smov 12   ;;  %s1134_s21 = smov 24  }
  0xcf   : > { %447 = vrot.lane.b32.xlu0 %v1258_v5, %s1118_s22  ;;  %s1135_s22 = smov 20  }
  0xd6   : > { %559 = vrot.lane.b32.xlu2 %v1258_v5, %s1119_s24  ;;  %561 = vrot.lane.b32.xlu1 %v1258_v5, %s1120_s25  ;;  %s1136_s24 = smov 28   ;;  %s846_s25 = sshll.u32 %s1176_s16, 3 }
  0xd7   : > { %616 = vrot.lane.b32.xlu0 %v1258_v5, %s1121_s3  ;;  %s715_s16 = scalar_lea.sflag [#allocation4], %s1243_s29 }
  0xde   : > { %310 = vrot.lane.b32.xlu2 %v1258_v5, %s1122_s5 }
 0x110   : > { %v389_v7 = vpop.permute.xlu2 %388 }
 0x118   : > { %v334_v8 = vpop.permute.xlu2 %333 }
 0x119   : > { %v339_v9 = vsel %vm218_vm1, %v334_v8, 0 }
 0x11a   : > { %348 = vmatpush.bf16.xpose.msrb.mxu0 %v339_v9 }
 0x120   : > { %v503_v20 = vpop.permute.xlu2 %502 }
 0x128   : > { %v275_v10 = vpop.permute.xlu1 %274  ;;  %v446_v25 = vpop.permute.xlu2 %445 }
 0x129   : > { %v217_v11 = vpop.permute.xlu0 %216 }
 0x12a   : > { %v223_v12 = vsel %vm218_vm1, %v217_v11, 0 }
 0x12b   : > { %232 = vmatpush.bf16.xpose.msra.mxu1 %v223_v12 }
 0x130   : > { %v391_v13 = vpop.permute.xlu1 %390  ;;  %v560_v28 = vpop.permute.xlu2 %559 }
 0x131   : > { %v277_v14 = vpop.permute.xlu0 %276  ;;  %v396_v15 = vsel %vm218_vm1, %v391_v13, 0 }
 0x132   : > { %829 = vmatmul.msk.bf16.vlgmr.msra.gmra.mxu1 %vm218_vm1, %v1258_v5  ;;  %v282_v16 = vsel %vm218_vm1, %v277_v14, 0 }
 0x133   : > { %291 = vmatpush.bf16.xpose.msra.mxu3 %v282_v16 }
 0x138   : > { %v332_v17 = vpop.permute.xlu1 %331  ;;  %v311_v62 = vpop.permute.xlu2 %310 }
 0x139   : > { %v505_v18 = vpop.permute.xlu0 %504  ;;  %833 = vmatmul.msk.bf16.vlgmr.msrb.gmra.mxu0 %vm218_vm1, %v332_v17 }
 0x13a   : > { %v510_v19 = vsel %vm218_vm1, %v505_v18, 0  ;;  %831 = vmatmul.msk.bf16.vlgmr.msra.gmra.mxu3 %vm218_vm1, %v275_v10 }
 0x13b   : > { %405 = vmatpush.bf16.xpose.msrb.mxu3 %v396_v15  ;;  %v316_v15 = vsel %vm257_vm3, %v311_v62, 0 }
 0x140   : > { %v619_v21 = vpop.permute.xlu1 %618 }
 0x141   : > { %v448_v22 = vpop.permute.xlu0 %447  ;;  %v624_v27 = vsel %vm218_vm1, %v619_v21, 0 }
 0x142   : > { %v453_v23 = vsel %vm218_vm1, %v448_v22, 0 }
 0x143   : > { %519 = vmatpush.bf16.xpose.msra.mxu3 %v510_v19  ;;  %462 = vmatpush.bf16.xpose.msra.mxu0 %v453_v23 }
 0x148   : > { %v562_v24 = vpop.permute.xlu1 %561 }
 0x149   : > { %v567_v26 = vsel %vm218_vm1, %v562_v24, 0  ;;  %v617_v29 = vpop.permute.xlu0 %616 }
 0x14a   : > { %835 = vmatmul.msk.bf16.vlgmr.msrb.gmra.mxu3 %vm218_vm1, %v389_v7  ;;  %837 = vmatmul.msk.bf16.vlgmr.msra.gmra.mxu0 %vm218_vm1, %v446_v25 }
 0x14b   : > { %633 = vmatpush.bf16.xpose.msrb.mxu3 %v624_v27  ;;  %576 = vmatpush.bf16.xpose.msrb.mxu0 %v567_v26 }
 0x15a   : > { %839 = vmatmul.msk.bf16.vlgmr.msra.gmra.mxu3 %vm218_vm1, %v503_v20  ;;  %841 = vmatmul.msk.bf16.vlgmr.msrb.gmra.mxu0 %vm218_vm1, %v560_v28 }
 0x16a   : > { %843 = vmatmul.msk.bf16.vlgmr.msrb.gmra.mxu3 %vm218_vm1, %v617_v29 }
 0x1af   : > { %v234_v30 = vpop.f32.mrf.mxu1 }
 0x1b0   : > { %v238_v31 = vmul.f32 0.5, %v234_v30 }
 0x1b2   : > { %v240_v32 = vsel %vm239_vm2, %v238_v31, -inf }
 0x1b3   : > { %241 = vmax.xlane.f32.xlu0 %v240_v32 }
 0x1b6   : > { %v350_v33 = vpop.f32.mrf.mxu0 }
 0x1b7   : > { %v236_v34 = vpop.f32.mrf.mxu1  ;;  %v354_v35 = vmul.f32 0.5, %v350_v33 }
 0x1b9   : > { %v355_v36 = vsel %vm239_vm2, %v354_v35, -inf }
 0x1ba   : > { %356 = vmax.xlane.f32.xlu2 %v355_v36 }
 0x1bd   : > { %v293_v37 = vpop.f32.mrf.mxu3 }
 0x1be   : > { %v297_v38 = vmul.f32 0.5, %v293_v37  ;;  %v352_v39 = vpop.f32.mrf.mxu0 }
 0x1c0   : > { %v298_v40 = vsel %vm239_vm2, %v297_v38, -inf }
 0x1c1   : > { %299 = vmax.xlane.f32.xlu1 %v298_v40 }
 0x1c5   : > { %v295_v41 = vpop.f32.mrf.mxu3 }
 0x1c7   : > { %252 = vrot.lane.b32.xlu0 %v1258_v5, %s1123_s6  ;;  %v464_v42 = vpop.f32.mrf.mxu0  ;;  %s725_s6 = scalar_lea.hbm %s1404_s2, %s846_s25 }
 0x1c8   : > { %v468_v43 = vmul.f32 0.5, %v464_v42 }
 0x1ca   : > { %v469_v44 = vsel %vm239_vm2, %v468_v43, -inf }
 0x1cb   : > { %470 = vmax.xlane.f32.xlu2 %v469_v44 }
 0x1cd   : > { %v407_v45 = vpop.f32.mrf.mxu3 }
 0x1ce   : > { %v1298_v46 = vmul.f32 0.5, %v407_v45 }
 0x1cf   : > { %v466_v47 = vpop.f32.mrf.mxu0 }
 0x1d0   : > { %v412_v48 = vsel %vm239_vm2, %v1298_v46, -inf }
 0x1d3   : > { %413 = vmax.xlane.f32.xlu2 %v412_v48 }
 0x1d5   : > { %v409_v49 = vpop.f32.mrf.mxu3 }
 0x1d7   : > { %v578_v50 = vpop.f32.mrf.mxu0 }
 0x1d8   : > { %v582_v51 = vmul.f32 0.5, %v578_v50 }
 0x1da   : > { %v583_v52 = vsel %vm239_vm2, %v582_v51, -inf }
 0x1db   : > { %584 = vmax.xlane.f32.xlu1 %v583_v52 }
 0x1dd   : > { %v521_v53 = vpop.f32.mrf.mxu3 }
 0x1de   : > { %v525_v56 = vmul.f32 0.5, %v521_v53 }
 0x1df   : > { %v580_v54 = vpop.f32.mrf.mxu0 }
 0x1e0   : > { %v526_v59 = vsel %vm239_vm2, %v525_v56, -inf }
 0x1e5   : > { %v523_v55 = vpop.f32.mrf.mxu3 }
 0x1ed   : > { %v635_v57 = vpop.f32.mrf.mxu3 }
 0x1ee   : > { %v1303_v58 = vmul.f32 0.5, %v635_v57 }
 0x1f0   : > { %v640_v60 = vsel %vm239_vm2, %v1303_v58, -inf }
 0x1f1   : > { %527 = vmax.xlane.f32.xlu0 %v526_v59  ;;  %641 = vmax.xlane.f32.xlu1 %v640_v60 }
 0x1f5   : > { %v637_v61 = vpop.f32.mrf.mxu3 }
 0x226   : > { %v242_v63 = vpop.xlane.xlu0 %241 }
 0x227   : > { %v243_v0 = vsub.f32 %v238_v31, %v242_v63 }
 0x229   : > { %v244_v1 = vmul.f32 1.442695, %v243_v0 }
 0x22b   : > { %940 = vpow2.f32 %v244_v1 }
 0x22d   : > { %v357_v2 = vpop.xlane.xlu2 %356 }
 0x22e   : > { %v358_v3 = vsub.f32 %v354_v35, %v357_v2 }
 0x230   : > { %v359_v4 = vmul.f32 1.442695, %v358_v3 }
 0x231   : > { %v1308_v6 = vpop.eup %940 }
 0x232   : > { %942 = vpow2.f32 %v359_v4  ;;  %v246_v7 = vsel %vm239_vm2, %v1308_v6, 0.0 }
 0x233   : > { %247 = vadd.xlane.f32.xlu1 %v246_v7 }
 0x234   : > { %v300_v8 = vpop.xlane.xlu1 %299 }
 0x235   : > { %v301_v9 = vsub.f32 %v297_v38, %v300_v8 }
 0x237   : > { %v302_v10 = vmul.f32 1.442695, %v301_v9 }
 0x238   : > { %v1312_v11 = vpop.eup %942 }
 0x239   : > { %944 = vpow2.f32 %v302_v10  ;;  %v253_v12 = vpop.permute.xlu0 %252  ;;  %v361_v13 = vsel %vm239_vm2, %v1312_v11, 0.0 }
 0x23a   : > { %v259_v14 = vsel %vm257_vm3, %v253_v12, 0  ;;  %362 = vadd.xlane.f32.xlu0 %v361_v13 }
 0x23b   : > { %268 = vmatpush.bf16.msra.mxu2 %v259_v14 }
 0x23e   : > { %v471_v18 = vpop.xlane.xlu2 %470 }
 0x23f   : > { %325 = vmatpush.bf16.msrb.mxu2 %v316_v15  ;;  %v1318_v16 = vpop.eup %944  ;;  %v472_v19 = vsub.f32 %v468_v43, %v471_v18 }
 0x240   : > { %v304_v17 = vsel %vm239_vm2, %v1318_v16, 0.0 }
 0x241   : > { %305 = vadd.xlane.f32.xlu2 %v304_v17  ;;  %v473_v20 = vmul.f32 1.442695, %v472_v19 }
 0x243   : > { %946 = vpow2.f32 %v473_v20 }
 0x246   : > { %v414_v21 = vpop.xlane.xlu2 %413 }
 0x247   : > { %v415_v23 = vsub.f32 %v1298_v46, %v414_v21 }
 0x249   : > { %v416_v26 = vmul.f32 1.442695, %v415_v23  ;;  %v947_v28 = vpop.eup %946 }
 0x24a   : > { %v475_v32 = vsel %vm239_vm2, %v947_v28, 0.0 }
 0x24b   : > { %948 = vpow2.f32 %v416_v26 }
 0x24c   : > { %424 = vrot.lane.b32.xlu1 %v1258_v5, %s1124_s17  ;;  %s177_s17 = scalar_lea.vmem [#allocation7], %s817_s4 }
 0x24e   : > { %538 = vrot.lane.b32.xlu0 %v1258_v5, %s1125_s27  ;;  %v585_v22 = vpop.xlane.xlu1 %584  ;;  %s727_s27 = sshll.u32 %s177_s17, 4  ;;  %s728_s27 = int_to_ptr.vmem [resolvable:$true] %s727_s27 }
 0x24f   : > { %v586_v25 = vsub.f32 %v582_v51, %v585_v22 }
 0x251   : > { %v587_v29 = vmul.f32 1.442695, %v586_v25  ;;  %v949_v34 = vpop.eup %948 }
 0x252   : > { %v418_v37 = vsel %vm239_vm2, %v949_v34, 0.0 }
 0x253   : > { %950 = vpow2.f32 %v587_v29 }
 0x256   : > { %481 = vrot.lane.b32.xlu0 %v1258_v5, %s1126_s7  ;;  %s729_s7 = sshll.u32 %s725_s6, 4  ;;  %s730_s7 = int_to_ptr.hbm [resolvable:$true] %s729_s7 }
 0x259   : > { %367 = vrot.lane.b32.xlu2 %v1258_v5, %s1127_s8  ;;  %v1329_v35 = vpop.eup %950  ;;  %s1046_s8 = sshra.s32 %s730_s7, 4  ;;  %s1047_s8 = int_to_ptr.hbm [resolvable:$true] %s1046_s8 }
 0x25a   : > { %v589_v39 = vsel %vm239_vm2, %v1329_v35, 0.0  ;;  %p1053_p12 = scmp.lt.s32.totalorder %s1047_s8, %s1404_s2 }
 0x264   : > { %v528_v24 = vpop.xlane.xlu0 %527  ;;  %v642_v31 = vpop.xlane.xlu1 %641 }
 0x265   : > { %v529_v27 = vsub.f32 %v525_v56, %v528_v24  ;;  %v643_v33 = vsub.f32 %v1303_v58, %v642_v31 }
 0x267   : > { %v530_v30 = vmul.f32 1.442695, %v529_v27  ;;  %v644_v36 = vmul.f32 1.442695, %v643_v33 }
 0x269   : > { %952 = vpow2.f32 %v530_v30 }
 0x26a   : > { %954 = vpow2.f32 %v644_v36 }
 0x26f   : > { %v1332_v38 = vpop.eup %952 }
 0x270   : > { %v532_v40 = vsel %vm239_vm2, %v1332_v38, 0.0  ;;  %v1338_v41 = vpop.eup %954 }
 0x271   : > { %v646_v42 = vsel %vm239_vm2, %v1338_v41, 0.0 }
 0x276   : > { %476 = vadd.xlane.f32.xlu1 %v475_v32 }
 0x27e   : > { %419 = vadd.xlane.f32.xlu1 %v418_v37 }
 0x280   : > { %590 = vadd.xlane.f32.xlu0 %v589_v39 }
 0x282   : > { %533 = vadd.xlane.f32.xlu2 %v532_v40 }
 0x28a   : > { %647 = vadd.xlane.f32.xlu2 %v646_v42 }
 0x297   : > { %652 = vrot.lane.b32.xlu1 %v1258_v5, %s1128_s13  ;;  %s1048_s13 = scalar_lea.hbm %s1047_s8, 8 }
 0x298   : > { %p1049_p1 = scmp.ne.s32.totalorder %s1047_s8, %s1048_s13 }
 0x29a   : > { %p1050_p3 = pnand %p1049_p1, %p1212_p13 }
 0x29c   : > { %p1051_p5 = pneg %p1050_p3 }
 0x2a2   : > { %595 = vrot.lane.b32.xlu2 %v1258_v5, %s1129_s14 }
 0x2a6   : > { %v248_v43 = vpop.xlane.xlu1 %247 }
 0x2a7   : > { %956 = vrcp.f32 %v248_v43 }
 0x2ad   : > { %v957_v44 = vpop.eup %956  ;;  %v363_v46 = vpop.xlane.xlu0 %362 }
 0x2ae   : > { %v250_v45 = vmul.f32 %v957_v44, %v1308_v6  ;;  %958 = vrcp.f32 %v363_v46 }
 0x2b0   : > { %v251_v47 = vpack.c.bf16 %v250_v45, %v250_v45 }
 0x2b2   : > { %830 = vmatmul.msk.bf16.vlgmr.msra.gmra.mxu2 %vm239_vm2, %v251_v47 }
 0x2b4   : > { %v306_v48 = vpop.xlane.xlu2 %305  ;;  %v959_v49 = vpop.eup %958 }
 0x2b5   : > { %960 = vrcp.f32 %v306_v48  ;;  %v365_v51 = vmul.f32 %v959_v49, %v1312_v11 }
 0x2b7   : > { %v366_v56 = vpack.c.bf16 %v365_v51, %v365_v51 }
 0x2bb   : > { %v961_v50 = vpop.eup %960 }
 0x2bc   : > { %v308_v52 = vmul.f32 %v961_v50, %v1318_v16  ;;  %v368_v53 = vpop.permute.xlu2 %367 }
 0x2bd   : > { %v373_v5 = vsel %vm257_vm3, %v368_v53, 0 }
 0x2be   : > { %382 = vmatpush.bf16.msrb.mxu1 %v373_v5  ;;  %v425_v54 = vpop.permute.xlu1 %424  ;;  %v309_v58 = vpack.c.bf16 %v308_v52, %v308_v52 }
 0x2bf   : > { %v430_v55 = vsel %vm257_vm3, %v425_v54, 0 }
 0x2c0   : > { %439 = vmatpush.bf16.msra.mxu2 %v430_v55  ;;  %v539_v57 = vpop.permute.xlu0 %538 }
 0x2c1   : > { %v544_v59 = vsel %vm257_vm3, %v539_v57, 0  ;;  %834 = vmatmul.msk.bf16.vlgmr.msrb.gmra.mxu1 %vm239_vm2, %v366_v56 }
 0x2c2   : > { %832 = vmatmul.msk.bf16.vlgmr.msrb.gmra.mxu2 %vm239_vm2, %v309_v58 }
 0x2c4   : > { %553 = vmatpush.bf16.msrb.mxu2 %v544_v59 }
 0x2c8   : > { %v482_v60 = vpop.permute.xlu0 %481 }
 0x2c9   : > { %v487_v61 = vsel %vm257_vm3, %v482_v60, 0 }
 0x2ca   : > { %496 = vmatpush.bf16.msra.mxu1 %v487_v61 }
 0x2e9   : > { %v477_v62 = vpop.xlane.xlu1 %476 }
 0x2ea   : > { %962 = vrcp.f32 %v477_v62 }
 0x2f0   : > { %v963_v63 = vpop.eup %962 }
 0x2f1   : > { %v479_v0 = vmul.f32 %v963_v63, %v947_v28  ;;  %v420_v1 = vpop.xlane.xlu1 %419 }
 0x2f2   : > { %964 = vrcp.f32 %v420_v1 }
 0x2f3   : > { %v480_v2 = vpack.c.bf16 %v479_v0, %v479_v0  ;;  %v591_v6 = vpop.xlane.xlu0 %590 }
 0x2f4   : > { %966 = vrcp.f32 %v591_v6 }
 0x2f5   : > { %v534_v3 = vpop.xlane.xlu2 %533  ;;  %838 = vmatmul.msk.bf16.vlgmr.msra.gmra.mxu1 %vm239_vm2, %v480_v2 }
 0x2f6   : > { %968 = vrcp.f32 %v534_v3 }
 0x2f8   : > { %v965_v4 = vpop.eup %964 }
 0x2f9   : > { %v422_v7 = vmul.f32 %v965_v4, %v949_v34 }
 0x2fa   : > { %v967_v10 = vpop.eup %966 }
 0x2fb   : > { %v423_v8 = vpack.c.bf16 %v422_v7, %v422_v7  ;;  %v593_v12 = vmul.f32 %v967_v10, %v1329_v35 }
 0x2fc   : > { %v969_v11 = vpop.eup %968 }
 0x2fd   : > { %v648_v9 = vpop.xlane.xlu2 %647  ;;  %836 = vmatmul.msk.bf16.vlgmr.msra.gmra.mxu2 %vm239_vm2, %v423_v8  ;;  %v536_v15 = vmul.f32 %v969_v11, %v1332_v38  ;;  %v594_v16 = vpack.c.bf16 %v593_v12, %v593_v12 }
 0x2fe   : > { %970 = vrcp.f32 %v648_v9 }
 0x2ff   : > { %v537_v19 = vpack.c.bf16 %v536_v15, %v536_v15 }
 0x304   : > { %v971_v20 = vpop.eup %970 }
 0x305   : > { %v596_v13 = vpop.permute.xlu2 %595  ;;  %v650_v21 = vmul.f32 %v971_v20, %v1338_v41 }
 0x306   : > { %v601_v14 = vsel %vm257_vm3, %v596_v13, 0 }
 0x307   : > { %610 = vmatpush.bf16.msrb.mxu1 %v601_v14  ;;  %v651_v22 = vpack.c.bf16 %v650_v21, %v650_v21 }
 0x309   : > { %v653_v17 = vpop.permute.xlu1 %652 }
 0x30a   : > { %v658_v18 = vsel %vm257_vm3, %v653_v17, 0  ;;  %842 = vmatmul.msk.bf16.vlgmr.msrb.gmra.mxu1 %vm239_vm2, %v594_v16 }
 0x30b   : > { %667 = vmatpush.bf16.msra.mxu2 %v658_v18 }
 0x30d   : > { %840 = vmatmul.msk.bf16.vlgmr.msrb.gmra.mxu2 %vm239_vm2, %v537_v19 }
 0x31d   : > { %844 = vmatmul.msk.bf16.vlgmr.msra.gmra.mxu2 %vm239_vm2, %v651_v22 }
 0x335   : > { %v270_v23 = vpop.f32.mrf.mxu2 }
 0x33d   : > { %v272_v24 = vpop.f32.mrf.mxu2 }
 0x33e   : > { %v384_v25 = vpop.f32.mrf.mxu1 }
 0x33f   : > { %678 = vrot.lane.b32.xlu2 %v384_v25, %s1130_s15  ;;  %s1052_s15 = scalar_lea.hbm %s1404_s2, 16 }
 0x340   : > { %p1054_p8 = scmp.lt.s32.totalorder %s1052_s15, %s1048_s13 }
 0x342   : > { %p1055_p7 = por %p1054_p8, %p1053_p12 }
 0x344   : > { %p1056_p9 = pnand %p1055_p7, %p1051_p5 }
 0x345   : > { %v327_v26 = vpop.f32.mrf.mxu2 }
 0x346   : > { %v386_v27 = vpop.f32.mrf.mxu1  ;;  %674 = vrot.lane.b32.xlu1 %v327_v26, %s1131_s18 }
 0x34d   : > { %v329_v28 = vpop.f32.mrf.mxu2 }
 0x372   : > { %v498_v29 = vpop.f32.mrf.mxu1 }
 0x373   : > { %686 = vrot.lane.b32.xlu2 %v498_v29, %s1132_s19 }
 0x37a   : > { %v500_v30 = vpop.f32.mrf.mxu1 }
 0x380   : > { %v441_v31 = vpop.f32.mrf.mxu2 }
 0x381   : > { %682 = vrot.lane.b32.xlu1 %v441_v31, %s1133_s20 }
 0x387   : > { %v612_v32 = vpop.f32.mrf.mxu1 }
 0x388   : > { %v443_v33 = vpop.f32.mrf.mxu2 }
 0x389   : > { %694 = vrot.lane.b32.xlu1 %v612_v32, %s1134_s21 }
 0x38f   : > { %v614_v34 = vpop.f32.mrf.mxu1 }
 0x390   : > { %v555_v35 = vpop.f32.mrf.mxu2 }
 0x391   : > { %690 = vrot.lane.b32.xlu0 %v555_v35, %s1135_s22 }
 0x398   : > { %v557_v36 = vpop.f32.mrf.mxu2 }
 0x399   : > { %v679_v40 = vpop.permute.xlu2 %678 }
 0x3a0   : > { %v669_v37 = vpop.f32.mrf.mxu2 }
 0x3a1   : > { %698 = vrot.lane.b32.xlu2 %v669_v37, %s1136_s24 }
 0x3a8   : > { %v671_v38 = vpop.f32.mrf.mxu2 }
 0x3b8   : > { %v675_v39 = vpop.permute.xlu1 %674 }
 0x3b9   : > { %v701_v42 = vsel %vm218_vm1, %v270_v23, %v675_v39 }
 0x3ba   : > { %v702_v44 = vsel %vm239_vm2, %v701_v42, %v679_v40 }
 0x3cd   : > { %v687_v43 = vpop.permute.xlu2 %686 }
 0x3f3   : > { %v683_v41 = vpop.permute.xlu1 %682 }
 0x3f4   : > { %v704_v45 = vsel %vm703_vm4, %v702_v44, %v683_v41 }
 0x3f5   : > { %v706_v47 = vsel %vm705_vm5, %v704_v45, %v687_v43 }
 0x3fb   : > { %v695_v48 = vpop.permute.xlu1 %694  ;;  %v699_v50 = vpop.permute.xlu2 %698 }
 0x403   : > { %v691_v46 = vpop.permute.xlu0 %690 }
 0x404   : > { %v708_v49 = vsel %vm707_vm6, %v706_v47, %v691_v46 }
 0x405   : > { %v710_v51 = vsel %vm709_vm7, %v708_v49, %v695_v48 }
 0x406   : > { %v712_v52 = vsel %vm711_vm8, %v710_v51, %v699_v50 }
 0x407   : > { %713 = vst.msk [vmem:[%s177_s17] sm:$0xff] %vm197_vm0, %v712_v52 }
 0x408   : > { %1059 = shalt.err (!%p1056_p9)
}
 0x409   : > { %857 = dma.vmem_to_hbm [thread:$0]  (%p1212_p13), %s728_s27, 128, %s730_s7, %s715_s16  }
 0x40a PF: > { %s741_s29 = sand.u32 1, %s1090_s9   ;;  %p1410_p10 = scmp.ge.s32.totalorder %s1102_s12, 2 }
 0x40b   : > { %s742_s20 = scalar_lea.sflag [#allocation4], %s741_s29 }
 0x40c   : > { %p868_p11 = pnand %p1410_p10, %p1217_p4 }
 0x40e   : > { %p869_p0 = pneg %p868_p11 }
 0x410   : > { %1085 = dma.done.wait (%p869_p0), %s742_s20, 128  }
 0x411   : > { %1087 = vsyncadd (%p869_p0), %s742_s20, 4294967168  ;;  %p16_p2 = scmp.ge.s32.totalorder %s1192_s23, 4   ;;  %s1411_s9 = smov %s1094_s10 }
 0x412   : > { %s1412_s10 = smov %s1098_s11  ;;  %s1413_s11 = smov %s1204_s26 }
 0x413   : > { %s1414_s12 = smov %s1192_s23  ;;  %18 = sbr.rel (!%p16_p2) target bundleno = 6 (0x6), region = 77 }
 0x418   :  { %748 = vsyncpa [#allocation3], 1 }
 0x419   :  { %750 = vsyncpa [#allocation3 + $0x1], 1 }
 0x41a   :  { %751 = vsyncpa [#allocation6], 1 }
 0x41b   :  { %752 = vsyncpa [#allocation4], 1 }
 0x41c   :  { %754 = vsyncpa [#allocation4 + $0x1], 1 }

</bundles_post_ra>
